<compile_context>
chip_gen: v5e
topology: v5e:2x2
jax: 0.10.0
libtpu: 0.0.40
codegen_flags: <defaults>
</compile_context>

<pallas_src>
import functools

import jax
import jax.numpy as jnp
from jax.experimental import pallas as pl
from jax.experimental.pallas import tpu as pltpu


def _round_up(x, m):
    return ((x + m - 1) // m) * m


def _bbd_kernel(xT_ref, w1T_ref, b1T_ref, w2cT_ref, b2cT_ref, oT_ref):
    """Transposed (lane-dense) MLP with mean-removal folded into layer 2.

    Shapes (per grid step, batch tile = block):
      xT:   (dim, block)      w1T:  (hidden, dim)   b1T:  (hidden, 1)
      w2cT: (dim, hidden)     b2cT: (dim, 1)        oT:   (dim, block)
    """
    xT = xT_ref[...]
    # Layer 1: h^T = tanh(W1^T x^T + b1^T)   (MXU matmul, EUP tanh, f32 acc).
    hT = jnp.tanh(
        jnp.dot(w1T_ref[...], xT, preferred_element_type=jnp.float32)
        + b1T_ref[...]
    )
    # Layer 2 (mean-removal pre-folded into W2'/b2'):
    #   dx_centered^T = W2'^T h^T + b2'^T
    dxT = (
        jnp.dot(w2cT_ref[...], hT.astype(w2cT_ref.dtype),
                preferred_element_type=jnp.float32)
        + b2cT_ref[...]
    )
    oT_ref[...] = dxT.astype(oT_ref.dtype)


def black_box_dynamics(t, xs, params, n_particles, n_dimension, *,
                       block_b=256, matmul_dtype=jnp.float32):
    """Forward pass of BlackBoxDynamics.

    t is unused (kept to mirror the PyTorch forward(t, xs) signature).
    xs: (B, dim) float32, dim = n_particles * n_dimension.
    matmul_dtype: set to jnp.bfloat16 on v6e/v7x for ~2x MXU throughput
                  (f32 accumulation is kept either way); keep f32 on v5e.
    """
    del t
    w1, b1, w2, b2 = params
    B, dim = xs.shape
    hidden = w1.shape[1]
    assert dim == n_particles * n_dimension

    # ---- Fold the particle-mean removal into layer 2 (exact, tiny precompute).
    # S[i, j] = 1 iff (i % n_dimension) == (j % n_dimension);
    # mean-removal is dx @ (I - S / n_particles).
    idx = jnp.arange(dim)
    same_dim = (idx[:, None] % n_dimension) == (idx[None, :] % n_dimension)
    m_fold = (jnp.eye(dim, dtype=jnp.float32)
              - same_dim.astype(jnp.float32) / n_particles)
    w2c = w2.astype(jnp.float32) @ m_fold          # (hidden, dim)
    b2c = b2.astype(jnp.float32) @ m_fold          # (1, dim)

    # ---- Transposed, lane-dense operands (batch on the 128-lane axis).
    w1T = w1.T.astype(matmul_dtype)                # (hidden, dim)
    b1T = b1.T.astype(jnp.float32)                 # (hidden, 1)
    w2cT = w2c.T.astype(matmul_dtype)              # (dim, hidden)
    b2cT = b2c.T.astype(jnp.float32)               # (dim, 1)

    # ---- Batch tiling: tile is a multiple of 128 lanes; pad B up to the grid.
    block = min(block_b, _round_up(B, 128))
    block = _round_up(block, 128)
    B_pad = _round_up(B, block)
    xT = xs.T.astype(matmul_dtype)                 # (dim, B)
    if B_pad != B:
        xT = jnp.pad(xT, ((0, 0), (0, B_pad - B)))

    grid = (B_pad // block,)

    bytes_accessed = int(
        xT.size * xT.dtype.itemsize
        + w1T.size * w1T.dtype.itemsize + b1T.size * 4
        + w2cT.size * w2cT.dtype.itemsize + b2cT.size * 4
        + dim * B_pad * 4
    )
    cost = pl.CostEstimate(
        flops=4 * B_pad * dim * hidden,            # two matmuls
        transcendentals=B_pad * hidden,            # tanh
        bytes_accessed=bytes_accessed,
    )

    outT = pl.pallas_call(
        _bbd_kernel,
        out_shape=jax.ShapeDtypeStruct((dim, B_pad), jnp.float32),
        grid_spec=pltpu.PrefetchScalarGridSpec(
            num_scalar_prefetch=0,
            grid=grid,
            in_specs=[
                pl.BlockSpec((dim, block), lambda i: (0, i)),    # x^T tile
                pl.BlockSpec((hidden, dim), lambda i: (0, 0)),   # W1^T
                pl.BlockSpec((hidden, 1), lambda i: (0, 0)),     # b1^T
                pl.BlockSpec((dim, hidden), lambda i: (0, 0)),   # W2'^T
                pl.BlockSpec((dim, 1), lambda i: (0, 0)),        # b2'^T
            ],
            out_specs=pl.BlockSpec((dim, block), lambda i: (0, i)),
        ),
        compiler_params=pltpu.CompilerParams(
            dimension_semantics=("parallel",),
        ),
        cost_estimate=cost,
    )(xT, w1T, b1T, w2cT, b2cT)

    # Drop batch padding and return to the module's (B, dim) layout.
    return outT[:, :B].T.astype(xs.dtype)


def _reference(xs, params, n_particles, n_dimension):
    """Pure-JAX reference mirroring the PyTorch module."""
    w1, b1, w2, b2 = params
    h = jnp.tanh(xs @ w1 + b1)
    dx = h @ w2 + b2
    dx3 = dx.reshape(-1, n_particles, n_dimension)
    dx3 = dx3 - jnp.mean(dx3, axis=1, keepdims=True)
    return dx3.reshape(-1, n_particles * n_dimension)


if __name__ == "__main__":
    # Small, module-consistent shapes.
    batch = 8
    n_particles = 4
    n_dimension = 2
    dim = n_particles * n_dimension          # 8
    hidden = 32

    key = jax.random.PRNGKey(0)
    k_x, k_w1, k_b1, k_w2, k_b2 = jax.random.split(key, 5)

    xs = jax.random.normal(k_x, (batch, dim), dtype=jnp.float32)
    w1 = jax.random.normal(k_w1, (dim, hidden), dtype=jnp.float32) * 0.1
    b1 = jax.random.normal(k_b1, (1, hidden), dtype=jnp.float32) * 0.1
    w2 = jax.random.normal(k_w2, (hidden, dim), dtype=jnp.float32) * 0.1
    b2 = jax.random.normal(k_b2, (1, dim), dtype=jnp.float32) * 0.1
    params = (w1, b1, w2, b2)

    t = jnp.array(0.0, dtype=jnp.float32)  # unused, mirrors forward(t, xs)

    # f32 matmuls for the correctness check; pass matmul_dtype=jnp.bfloat16 on
    # v6e/v7x in production for MXU throughput.
    out = black_box_dynamics(t, xs, params, n_particles, n_dimension)
    out = jax.block_until_ready(out)

    ref = _reference(xs, params, n_particles, n_dimension)
    assert out.shape == (batch, dim)
    assert jnp.allclose(out, ref, atol=1e-5, rtol=1e-5), "mismatch vs reference"

    print("KERNEL_OK")
</pallas_src>

<mosaic_0001>
module attributes {stable_mosaic.version = 11 : i64} {
  func.func @_bbd_kernel(%arg0: i32, %arg1: memref<8x128xf32, #tpu.memory_space<vmem>>, %arg2: memref<32x8xf32, #tpu.memory_space<vmem>>, %arg3: memref<32x1xf32, #tpu.memory_space<vmem>>, %arg4: memref<8x32xf32, #tpu.memory_space<vmem>>, %arg5: memref<8x1xf32, #tpu.memory_space<vmem>>, %arg6: memref<8x128xf32, #tpu.memory_space<vmem>>) attributes {dimension_semantics = [#tpu.dimension_semantics<parallel>], iteration_bounds = array<i64: 1>, scalar_prefetch = 0 : i64, scratch_operands = 0 : i64, tpu.core_type = #tpu.core_type<tc>, window_params = [{transform_indices = @transform_0, window_bounds = array<i64: 8, 128>}, {pipeline_mode = #tpu.pipeline_mode<synchronous>, transform_indices = @transform_1, window_bounds = array<i64: 32, 8>}, {pipeline_mode = #tpu.pipeline_mode<synchronous>, transform_indices = @transform_2, window_bounds = array<i64: 32, 1>}, {pipeline_mode = #tpu.pipeline_mode<synchronous>, transform_indices = @transform_3, window_bounds = array<i64: 8, 32>}, {pipeline_mode = #tpu.pipeline_mode<synchronous>, transform_indices = @transform_4, window_bounds = array<i64: 8, 1>}, {transform_indices = @transform_5, window_bounds = array<i64: 8, 128>}]} {
    %c0 = arith.constant 0 : index
    %c0_0 = arith.constant 0 : index
    %0 = vector.load %arg1[%c0, %c0_0] : memref<8x128xf32, #tpu.memory_space<vmem>>, vector<8x128xf32>
    %c0_1 = arith.constant 0 : index
    %c0_2 = arith.constant 0 : index
    %1 = vector.load %arg2[%c0_1, %c0_2] : memref<32x8xf32, #tpu.memory_space<vmem>>, vector<32x8xf32>
    %cst = arith.constant dense<0.000000e+00> : vector<32x128xf32>
    %2 = tpu.matmul %1, %0, %cst {dimension_numbers = #tpu.dot_dimension_numbers<[1], [0], [0], [1], [0, 0, 1, 1], [], []>} : vector<32x8xf32>, vector<8x128xf32>, vector<32x128xf32> -> vector<32x128xf32>
    %c0_3 = arith.constant 0 : index
    %c0_4 = arith.constant 0 : index
    %3 = vector.load %arg3[%c0_3, %c0_4] : memref<32x1xf32, #tpu.memory_space<vmem>>, vector<32x1xf32>
    %4 = vector.broadcast %3 : vector<32x1xf32> to vector<32x128xf32>
    %5 = arith.addf %2, %4 : vector<32x128xf32>
    %6 = math.tanh %5 : vector<32x128xf32>
    %c0_5 = arith.constant 0 : index
    %c0_6 = arith.constant 0 : index
    %7 = vector.load %arg4[%c0_5, %c0_6] : memref<8x32xf32, #tpu.memory_space<vmem>>, vector<8x32xf32>
    %cst_7 = arith.constant dense<0.000000e+00> : vector<8x128xf32>
    %8 = tpu.matmul %7, %6, %cst_7 {dimension_numbers = #tpu.dot_dimension_numbers<[1], [0], [0], [1], [0, 0, 1, 1], [], []>} : vector<8x32xf32>, vector<32x128xf32>, vector<8x128xf32> -> vector<8x128xf32>
    %c0_8 = arith.constant 0 : index
    %c0_9 = arith.constant 0 : index
    %9 = vector.load %arg5[%c0_8, %c0_9] : memref<8x1xf32, #tpu.memory_space<vmem>>, vector<8x1xf32>
    %10 = vector.broadcast %9 : vector<8x1xf32> to vector<8x128xf32>
    %11 = arith.addf %8, %10 : vector<8x128xf32>
    %c0_10 = arith.constant 0 : index
    %c0_11 = arith.constant 0 : index
    %12 = vector.load %arg6[%c0_10, %c0_11] : memref<8x128xf32, #tpu.memory_space<vmem>>, vector<8x128xf32>
    tpu.vector_store %arg6[%c0_10, %c0_11], %11 {strides = array<i32>} : memref<8x128xf32, #tpu.memory_space<vmem>>, vector<8x128xf32>,
    return
  }
  func.func @transform_0(%arg0: i32) -> (i32, i32) {
    %c0_i32 = arith.constant 0 : i32
    %c0_i32_0 = arith.constant 0 : i32
    return %c0_i32, %arg0 : i32, i32
  }
  func.func @transform_1(%arg0: i32) -> (i32, i32) {
    %c0_i32 = arith.constant 0 : i32
    %c0_i32_0 = arith.constant 0 : i32
    %c0_i32_1 = arith.constant 0 : i32
    return %c0_i32, %c0_i32_0 : i32, i32
  }
  func.func @transform_2(%arg0: i32) -> (i32, i32) {
    %c0_i32 = arith.constant 0 : i32
    %c0_i32_0 = arith.constant 0 : i32
    %c0_i32_1 = arith.constant 0 : i32
    return %c0_i32, %c0_i32_0 : i32, i32
  }
  func.func @transform_3(%arg0: i32) -> (i32, i32) {
    %c0_i32 = arith.constant 0 : i32
    %c0_i32_0 = arith.constant 0 : i32
    %c0_i32_1 = arith.constant 0 : i32
    return %c0_i32, %c0_i32_0 : i32, i32
  }
  func.func @transform_4(%arg0: i32) -> (i32, i32) {
    %c0_i32 = arith.constant 0 : i32
    %c0_i32_0 = arith.constant 0 : i32
    %c0_i32_1 = arith.constant 0 : i32
    return %c0_i32, %c0_i32_0 : i32, i32
  }
  func.func @transform_5(%arg0: i32) -> (i32, i32) {
    %c0_i32 = arith.constant 0 : i32
    %c0_i32_0 = arith.constant 0 : i32
    return %c0_i32, %arg0 : i32, i32
  }
}

</mosaic_0001>

<bundles_post_ra>
// kernel: tpu_custom_call.1
= control target key start
LH: loop header
LB: loop body
LE: loop exit
PB: predicated region body
PF: predicated region fallthrough
CT: control target
= control target key end

     0   :  { %vm50_vm0 = vcmask 64512   ;;  %v190_v5 = vmov 0   ;;  %s262_s0 = inlined_call_operand.vmem [shape: f32[8,128], index: 0, kind: input, shape index: {}]   ;;  %s263_s1 = inlined_call_operand.vmem [shape: f32[32,8], index: 1, kind: input, shape index: {}]   ;;  %s264_s2 = inlined_call_operand.vmem [shape: f32[32,1], index: 2, kind: input, shape index: {}]   ;;  %s265_s3 = inlined_call_operand.vmem [shape: f32[8,32], index: 3, kind: input, shape index: {}]   ;;  %s266_s4 = inlined_call_operand.vmem [shape: f32[8,1], index: 4, kind: input, shape index: {}]   ;;  %s267_s5 = inlined_call_operand.hbm [shape: f32[8,128], index: 5, kind: output, shape index: {}]  }
   0x1   :  { %v21_v0 = vld [vmem:[%s262_s0] sm:$0xff]  ;;  %v23_v1 = vld [vmem:[%s263_s1 + $0x8] sm:$0xff]  ;;  %v25_v2 = vld [vmem:[%s263_s1 + $0x18] sm:$0xff]  ;;  %153 = vset.pattern.permute.xlu0 %v190_v5 }
   0x2   :  { %149 = vmatpush.msra.mxu2 %v21_v0  ;;  %150 = vmatpush.msra.mxu3 %v21_v0  ;;  %v29_v3 = vld [vmem:[%s264_s2 + $0x18] sm:$0xff]  ;;  %v22_v4 = vld [vmem:[%s263_s1] sm:$0xff]  ;;  %v27_v6 = vld [vmem:[%s264_s2 + $0x8] sm:$0xff] }
   0x3   :  { %145 = vmatmul.msk.f32.vlgmr.msra.gmra.mxu2 %vm50_vm0, %v23_v1  ;;  %147 = vmatmul.msk.f32.vlgmr.msra.gmra.mxu3 %vm50_vm0, %v25_v2 }
   0x4   :  { %78 = vmatpush.msra.mxu0 %v21_v0 }
   0x5   :  { %10 = vsyncpa [#allocation3], 0  ;;  %47 = vperm.xlu0 %153, %v29_v3   ;;  %144 = vmatmul.msk.f32.vlgmr.msra.gmra.mxu0 %vm50_vm0, %v22_v4  ;;  %v24_v7 = vld [vmem:[%s263_s1 + $0x10] sm:$0xff]  ;;  %v26_v9 = vld [vmem:[%s264_s2] sm:$0xff]  ;;  %vm103_vm1 = vcmask 261120   ;;  %s135_s15 = sshll.u32 %s267_s5, 4  ;;  %s136_s15 = int_to_ptr.hbm [resolvable:$true] %s135_s15 }
   0x6   :  { %154 = vset.pattern.permute.xlu1 %v190_v5  ;;  %155 = vset.pattern.permute.xlu2 %v190_v5  ;;  %v28_v8 = vld [vmem:[%s264_s2 + $0x10] sm:$0xff]  ;;  %v97_v10 = vld [vmem:[%s266_s4] sm:$0xff]  ;;  %s191_s4 = smov [#allocation2]  }
   0x7   :  { %37 = vperm.xlu1 %154, %v27_v6   ;;  %100 = vperm.xlu2 %155, %v97_v10   ;;  %v96_v26 = vld [vmem:[%s265_s3] sm:$0xff]  ;;  %s133_s12 = sshll.u32 %s191_s4, 4  ;;  %s134_s12 = int_to_ptr.vmem [resolvable:$true] %s133_s12 }
   0xb   :  { %146 = vmatmul.msk.f32.gmra.mxu2 %vm50_vm0, %v24_v7 }
   0xd   :  { %42 = vperm.xlu0 %153, %v28_v8  }
   0xf   :  { %32 = vperm.xlu1 %154, %v26_v9  }
  0x61   :  { %v101_v28 = vpop.permute.xlu2 %100 }
  0x77   :  { %v48_v11 = vpop.permute.xlu0 %47 }
  0x79   :  { %v38_v12 = vpop.permute.xlu1 %37 }
  0x7f   :  { %v43_v16 = vpop.permute.xlu0 %42 }
  0x81   :  { %v33_v17 = vpop.permute.xlu1 %32 }
  0x82   :  { %v80_v18 = vpop.f32.mrf.mxu0 }
  0x83   :  { %v81_v23 = vadd.f32 %v80_v18, %v33_v17 }
  0x86   :  { %v83_v13 = vpop.f32.mrf.mxu2  ;;  %v89_v14 = vpop.f32.mrf.mxu3 }
  0x87   :  { %v90_v15 = vadd.f32 %v89_v14, %v48_v11  ;;  %v84_v20 = vadd.f32 %v83_v13, %v38_v12 }
  0x89   :  { %156 = vtanh.f32 %v90_v15 }
  0x8e   :  { %v86_v19 = vpop.f32.mrf.mxu2 }
  0x8f   :  { %v87_v21 = vadd.f32 %v86_v19, %v43_v16  ;;  %v157_v22 = vpop.eup %156 }
  0x90   :  { %119 = vmatpush.msra.mxu1 %v157_v22 }
  0x91   :  { %158 = vtanh.f32 %v87_v21 }
  0x92   :  { %160 = vtanh.f32 %v84_v20 }
  0x93   :  { %162 = vtanh.f32 %v81_v23 }
  0x97   :  { %v159_v24 = vpop.eup %158 }
  0x98   :  { %120 = vmatpush.msra.mxu1 %v159_v24  ;;  %v161_v25 = vpop.eup %160 }
  0x99   :  { %v163_v27 = vpop.eup %162 }
  0x9a   :  { %121 = vmatpush.msra.mxu1 %v161_v25 }
  0x9c   :  { %122 = vmatpush.msra.mxu1 %v163_v27 }
  0x9d   :  { %148 = vmatmul.msk.f32.vlgmr.msra.gmra.mxu1 %vm103_vm1, %v96_v26 }
 0x11a   :  { %v124_v29 = vpop.f32.mrf.mxu1 }
 0x11b   :  { %v125_v30 = vadd.f32 %v124_v29, %v101_v28 }
 0x11d   :  { %127 = vst [vmem:[#allocation2] sm:$0xff] %v125_v30 }
 0x11e   :  { %138 = dma.vmem_to_hbm [thread:$0]  %s134_s12, 128, %s136_s15, [#allocation3]  }
 0x11f   :  { %188 = dma.done.wait [#allocation3], 128  }
 0x120   :  { %189 = vsyncadd [#allocation3], 4294967168 }
 0x121   :  { %143 = vsyncpa [#allocation3], 1 }

</bundles_post_ra>
